<compile_context>
chip_gen: v7x
topology: tpu7x:2x2x1
jax: 0.10.0
libtpu: 0.0.40
codegen_flags: <defaults>
</compile_context>

<pallas_src>
import functools
import math

import jax
import jax.numpy as jnp
from jax.experimental import pallas as pl
from jax.experimental.pallas import tpu as pltpu

LANE = 128
_MIB = 1024 * 1024


def _round_up(n: int, m: int) -> int:
    return ((n + m - 1) // m) * m


def _vmem_capacity_bytes() -> int:
    """Physical VMEM per TensorCore; conservative fallback = v7x (64 MiB)."""
    try:
        return int(pltpu.get_tpu_info().vmem_capacity_bytes)
    except Exception:  # query unavailable -> assume the smallest generation
        return 64 * _MIB


def _fused_mlp_kernel(*refs, num_layers: int, sigmoid_output: bool):
    """refs = (x_ref, w0_ref, b0_ref, ..., w{L-1}_ref, b{L-1}_ref, o_ref).

    One grid step pushes a (tile_m, K0) activation tile through every layer;
    intermediates live only in vregs / compiler-managed VMEM.
    """
    x_ref = refs[0]
    o_ref = refs[-1]
    wb = refs[1:-1]

    h = x_ref[...].astype(jnp.float32)
    for i in range(num_layers):
        w_ref = wb[2 * i]          # (K_i, N_pad_i)  bf16
        b_ref = wb[2 * i + 1]      # (1, N_pad_i)    f32
        # bf16 x bf16 on the MXU, f32 accumulation.
        h = jnp.dot(h.astype(jnp.bfloat16), w_ref[...],
                    preferred_element_type=jnp.float32)
        h = h + b_ref[...]         # f32 bias add (VPU)
        if i < num_layers - 1:
            h = jnp.maximum(h, 0.0)
        elif sigmoid_output:
            h = jax.nn.sigmoid(h)  # EUP
    o_ref[...] = h.astype(o_ref.dtype)


def _fused_mlp(x, weights_t, biases, sigmoid_output, tile_m, vmem_limit_bytes):
    """x: (M_pad, K0); weights_t[i]: (K_i, N_pad_i) bf16; biases[i]: (1, N_pad_i) f32."""
    m_pad, k0 = x.shape
    n_last_pad = weights_t[-1].shape[1]
    num_layers = len(weights_t)
    assert m_pad % tile_m == 0

    in_specs = [pl.BlockSpec((tile_m, k0), lambda i: (i, 0))]
    operands = [x]
    for w_t, b in zip(weights_t, biases):
        # Constant index_map -> weights/biases stay resident across all M tiles.
        # NOTE: Pallas still double-buffers these by default; the VMEM budget in
        # MLPPallas._choose_tile_m counts them at 2x.
        in_specs.append(pl.BlockSpec(w_t.shape, lambda i: (0, 0)))
        in_specs.append(pl.BlockSpec(b.shape, lambda i: (0, 0)))
        operands.append(w_t)
        operands.append(b)

    kernel = functools.partial(
        _fused_mlp_kernel, num_layers=num_layers, sigmoid_output=sigmoid_output)

    return pl.pallas_call(
        kernel,
        out_shape=jax.ShapeDtypeStruct((m_pad, n_last_pad), x.dtype),
        grid_spec=pl.GridSpec(
            grid=(m_pad // tile_m,),
            in_specs=in_specs,
            out_specs=pl.BlockSpec((tile_m, n_last_pad), lambda i: (i, 0)),
        ),
        compiler_params=pltpu.CompilerParams(
            dimension_semantics=("parallel",),
            vmem_limit_bytes=int(vmem_limit_bytes)),
    )(*operands)


class MLPPallas:
    """Pallas re-implementation of SAM's MLP module (fused, bf16 weights, lane-dense)."""

    def __init__(self, input_dim, hidden_dim, output_dim, num_layers,
                 sigmoid_output=False, key=None, dtype=jnp.float32):
        self.num_layers = num_layers
        self.sigmoid_output = sigmoid_output
        self.input_dim = input_dim
        self.output_dim = output_dim
        self.dtype = dtype

        h = [hidden_dim] * (num_layers - 1)
        dims = list(zip([input_dim] + h, h + [output_dim]))

        if key is None:
            key = jax.random.PRNGKey(0)

        self.weights_t = []   # transposed, N lane-padded, bf16: (K_i, N_pad_i)
        self.biases = []      # N lane-padded, f32: (1, N_pad_i)

        prev_k_pad = input_dim  # layer 0 keeps the TRUE input feature dim
        for li, (n_in, n_out) in enumerate(dims):
            key, kw, kb = jax.random.split(key, 3)
            # deterministic init mimicking nn.Linear's U(-1/sqrt(in), 1/sqrt(in))
            bound = 1.0 / (n_in ** 0.5)
            w = jax.random.uniform(kw, (n_out, n_in), jnp.float32,
                                   minval=-bound, maxval=bound)
            b = jax.random.uniform(kb, (n_out,), jnp.float32,
                                   minval=-bound, maxval=bound)
            w_t = jnp.transpose(w)                      # (n_in, n_out)

            k_pad = prev_k_pad                          # == n_in for layer 0,
            n_pad = _round_up(n_out, LANE)              # else prev layer's N_pad
            w_t_pad = jnp.zeros((k_pad, n_pad), jnp.float32).at[:n_in, :n_out].set(w_t)
            b_pad = jnp.zeros((1, n_pad), jnp.float32).at[0, :n_out].set(b)

            self.weights_t.append(w_t_pad.astype(jnp.bfloat16))  # MXU-native dtype
            self.biases.append(b_pad)                            # f32 (tiny)
            prev_k_pad = n_pad

        self._k0 = self.weights_t[0].shape[0]           # true input_dim
        self._n_last_pad = self.weights_t[-1].shape[1]
        self._max_n_pad = max(w.shape[1] for w in self.weights_t)
        # Resident bytes incl. Pallas' default double-buffering of constant blocks.
        self._resident_weight_bytes = 2 * (
            sum(w.size * w.dtype.itemsize for w in self.weights_t)
            + sum(b.size * b.dtype.itemsize for b in self.biases))

    # ---- tiling / VMEM budgeting -------------------------------------------

    def _per_row_bytes(self, x_itemsize, out_itemsize):
        return (2 * self._k0 * x_itemsize            # input tile, double-buffered
                + 2 * self._n_last_pad * out_itemsize  # output tile, double-buffered
                + 2 * self._max_n_pad * 4)             # ~2 live f32 intermediates

    def _choose_tile_m(self, m, x_itemsize, out_itemsize, max_tile_m=512):
        cap = _vmem_capacity_bytes()
        # ~56 MiB of v5e/v6e's 128 MiB; ~28 MiB of v7x's 64 MiB.
        budget = min(int(cap * 0.45), 56 * _MIB)

        per_row = self._per_row_bytes(x_itemsize, out_itemsize)
        avail = budget - self._resident_weight_bytes
        if avail < per_row * 8:
            # Degenerate case: weights alone (double-buffered) eat the budget.
            # Fall back to the minimum tile; vmem_limit below is raised to match.
            tile_m = 8
        else:
            tile_m = min(max_tile_m, max(8, (avail // per_row) // 8 * 8))

        # Keep the M grid >= 2 steps whenever possible so v7x's second
        # TensorCore gets work (neutral on single-TC v5e/v6e).
        m8 = _round_up(max(m, 1), 8)
        if m8 >= 16:
            tile_m = min(tile_m, _round_up(m8 // 2, 8))
        tile_m = max(8, min(tile_m, m8))
        return tile_m

    def _vmem_limit_bytes(self, tile_m, x_itemsize, out_itemsize):
        cap = _vmem_capacity_bytes()
        need = (self._resident_weight_bytes
                + tile_m * self._per_row_bytes(x_itemsize, out_itemsize)
                + 8 * _MIB)                 # internal / Mosaic scratch headroom
        need = max(need, 32 * _MIB)         # never below the smallest default
        return min(need, cap)

    # ---- forward ------------------------------------------------------------

    def __call__(self, x):
        lead_shape = x.shape[:-1]
        m = int(math.prod(lead_shape)) if lead_shape else 1
        h = x.reshape(m, self.input_dim)

        x_itemsize = h.dtype.itemsize
        out_itemsize = h.dtype.itemsize
        tile_m = self._choose_tile_m(m, x_itemsize, out_itemsize)
        m_pad = _round_up(m, tile_m)
        if m_pad != m:
            # Row pad only (feature axis keeps its true extent); padded rows are
            # inert and sliced off below.
            h = jnp.pad(h, ((0, m_pad - m), (0, 0)))

        vmem_limit = self._vmem_limit_bytes(tile_m, x_itemsize, out_itemsize)
        out_pad = _fused_mlp(h, self.weights_t, self.biases,
                             self.sigmoid_output, tile_m, vmem_limit)
        out = out_pad[:m, :self.output_dim]
        return out.reshape(*lead_shape, self.output_dim)


def _reference(mlp, x):
    """Pure-JAX reference using the same (bf16) weights for a fair check."""
    lead_shape = x.shape[:-1]
    h = x.reshape(-1, mlp.input_dim).astype(jnp.float32)
    for i in range(mlp.num_layers):
        w = mlp.weights_t[i].astype(jnp.float32)
        b = mlp.biases[i]
        h = jnp.dot(h.astype(jnp.bfloat16).astype(jnp.float32), w) + b
        if i < mlp.num_layers - 1:
            h = jnp.maximum(h, 0.0)
    if mlp.sigmoid_output:
        h = jax.nn.sigmoid(h)
    return h[:, :mlp.output_dim].reshape(*lead_shape, mlp.output_dim)


if __name__ == "__main__":
    key = jax.random.PRNGKey(0)
    k_x, k_p = jax.random.split(key)

    # Small shapes consistent with the module: batch=2, seq=8, input_dim=32.
    B, S = 2, 8
    input_dim, hidden_dim, output_dim, num_layers = 32, 64, 16, 3

    x = jax.random.normal(k_x, (B, S, input_dim), jnp.float32)

    mlp = MLPPallas(input_dim, hidden_dim, output_dim, num_layers,
                    sigmoid_output=True, key=k_p)

    out = jax.block_until_ready(mlp(x))
    ref = _reference(mlp, x)

    assert out.shape == (B, S, output_dim), out.shape
    assert jnp.allclose(out, ref, atol=1e-3, rtol=1e-3), "mismatch vs reference"

    print("KERNEL_OK")
</pallas_src>

<mosaic_0001>
module attributes {stable_mosaic.version = 11 : i64} {
  func.func @_fused_mlp_kernel(%arg0: i32, %arg1: memref<8x32xf32, #tpu.memory_space<vmem>>, %arg2: memref<32x128xbf16, #tpu.memory_space<vmem>>, %arg3: memref<1x128xf32, #tpu.memory_space<vmem>>, %arg4: memref<128x128xbf16, #tpu.memory_space<vmem>>, %arg5: memref<1x128xf32, #tpu.memory_space<vmem>>, %arg6: memref<128x128xbf16, #tpu.memory_space<vmem>>, %arg7: memref<1x128xf32, #tpu.memory_space<vmem>>, %arg8: memref<8x128xf32, #tpu.memory_space<vmem>>) attributes {dimension_semantics = [#tpu.dimension_semantics<parallel>], iteration_bounds = array<i64: 2>, scalar_prefetch = 0 : i64, scratch_operands = 0 : i64, tpu.core_type = #tpu.core_type<tc>, window_params = [{transform_indices = @transform_0, window_bounds = array<i64: 8, 32>}, {pipeline_mode = #tpu.pipeline_mode<synchronous>, transform_indices = @transform_1, window_bounds = array<i64: 32, 128>}, {pipeline_mode = #tpu.pipeline_mode<synchronous>, transform_indices = @transform_2, window_bounds = array<i64: 1, 128>}, {pipeline_mode = #tpu.pipeline_mode<synchronous>, transform_indices = @transform_3, window_bounds = array<i64: 128, 128>}, {pipeline_mode = #tpu.pipeline_mode<synchronous>, transform_indices = @transform_4, window_bounds = array<i64: 1, 128>}, {pipeline_mode = #tpu.pipeline_mode<synchronous>, transform_indices = @transform_5, window_bounds = array<i64: 128, 128>}, {pipeline_mode = #tpu.pipeline_mode<synchronous>, transform_indices = @transform_6, window_bounds = array<i64: 1, 128>}, {transform_indices = @transform_7, window_bounds = array<i64: 8, 128>}]} {
    %c0 = arith.constant 0 : index
    %c0_0 = arith.constant 0 : index
    %0 = vector.load %arg1[%c0, %c0_0] : memref<8x32xf32, #tpu.memory_space<vmem>>, vector<8x32xf32>
    %1 = arith.truncf %0 : vector<8x32xf32> to vector<8x32xbf16>
    %c0_1 = arith.constant 0 : index
    %c0_2 = arith.constant 0 : index
    %2 = vector.load %arg2[%c0_1, %c0_2] : memref<32x128xbf16, #tpu.memory_space<vmem>>, vector<32x128xbf16>
    %cst = arith.constant dense<0.000000e+00> : vector<8x128xf32>
    %3 = tpu.matmul %1, %2, %cst {dimension_numbers = #tpu.dot_dimension_numbers<[1], [0], [0], [1], [0, 0, 1, 1], [], []>} : vector<8x32xbf16>, vector<32x128xbf16>, vector<8x128xf32> -> vector<8x128xf32>
    %c0_3 = arith.constant 0 : index
    %c0_4 = arith.constant 0 : index
    %4 = vector.load %arg3[%c0_3, %c0_4] : memref<1x128xf32, #tpu.memory_space<vmem>>, vector<1x128xf32>
    %5 = vector.broadcast %4 : vector<1x128xf32> to vector<8x128xf32>
    %6 = arith.addf %3, %5 : vector<8x128xf32>
    %cst_5 = arith.constant 0.000000e+00 : f32
    %7 = vector.broadcast %cst_5 : f32 to vector<8x128xf32>
    %8 = arith.maximumf %6, %7 : vector<8x128xf32>
    %9 = arith.truncf %8 : vector<8x128xf32> to vector<8x128xbf16>
    %c0_6 = arith.constant 0 : index
    %c0_7 = arith.constant 0 : index
    %10 = vector.load %arg4[%c0_6, %c0_7] : memref<128x128xbf16, #tpu.memory_space<vmem>>, vector<128x128xbf16>
    %cst_8 = arith.constant dense<0.000000e+00> : vector<8x128xf32>
    %11 = tpu.matmul %9, %10, %cst_8 {dimension_numbers = #tpu.dot_dimension_numbers<[1], [0], [0], [1], [0, 0, 1, 1], [], []>} : vector<8x128xbf16>, vector<128x128xbf16>, vector<8x128xf32> -> vector<8x128xf32>
    %c0_9 = arith.constant 0 : index
    %c0_10 = arith.constant 0 : index
    %12 = vector.load %arg5[%c0_9, %c0_10] : memref<1x128xf32, #tpu.memory_space<vmem>>, vector<1x128xf32>
    %13 = vector.broadcast %12 : vector<1x128xf32> to vector<8x128xf32>
    %14 = arith.addf %11, %13 : vector<8x128xf32>
    %cst_11 = arith.constant 0.000000e+00 : f32
    %15 = vector.broadcast %cst_11 : f32 to vector<8x128xf32>
    %16 = arith.maximumf %14, %15 : vector<8x128xf32>
    %17 = arith.truncf %16 : vector<8x128xf32> to vector<8x128xbf16>
    %c0_12 = arith.constant 0 : index
    %c0_13 = arith.constant 0 : index
    %18 = vector.load %arg6[%c0_12, %c0_13] : memref<128x128xbf16, #tpu.memory_space<vmem>>, vector<128x128xbf16>
    %cst_14 = arith.constant dense<0.000000e+00> : vector<8x128xf32>
    %19 = tpu.matmul %17, %18, %cst_14 {dimension_numbers = #tpu.dot_dimension_numbers<[1], [0], [0], [1], [0, 0, 1, 1], [], []>} : vector<8x128xbf16>, vector<128x128xbf16>, vector<8x128xf32> -> vector<8x128xf32>
    %c0_15 = arith.constant 0 : index
    %c0_16 = arith.constant 0 : index
    %20 = vector.load %arg7[%c0_15, %c0_16] : memref<1x128xf32, #tpu.memory_space<vmem>>, vector<1x128xf32>
    %21 = vector.broadcast %20 : vector<1x128xf32> to vector<8x128xf32>
    %22 = arith.addf %19, %21 : vector<8x128xf32>
    %23 = arith.negf %22 : vector<8x128xf32>
    %24 = math.exp %23 : vector<8x128xf32>
    %cst_17 = arith.constant 1.000000e+00 : f32
    %25 = vector.broadcast %cst_17 : f32 to vector<8x128xf32>
    %26 = arith.addf %25, %24 : vector<8x128xf32>
    %27 = arith.divf %25, %26 : vector<8x128xf32>
    %c0_18 = arith.constant 0 : index
    %c0_19 = arith.constant 0 : index
    %28 = vector.load %arg8[%c0_18, %c0_19] : memref<8x128xf32, #tpu.memory_space<vmem>>, vector<8x128xf32>
    tpu.vector_store %arg8[%c0_18, %c0_19], %27 {strides = array<i32>} : memref<8x128xf32, #tpu.memory_space<vmem>>, vector<8x128xf32>,
    return
  }
  func.func @transform_0(%arg0: i32) -> (i32, i32) {
    %c0_i32 = arith.constant 0 : i32
    %c0_i32_0 = arith.constant 0 : i32
    return %arg0, %c0_i32 : i32, i32
  }
  func.func @transform_1(%arg0: i32) -> (i32, i32) {
    %c0_i32 = arith.constant 0 : i32
    %c0_i32_0 = arith.constant 0 : i32
    %c0_i32_1 = arith.constant 0 : i32
    return %c0_i32, %c0_i32_0 : i32, i32
  }
  func.func @transform_2(%arg0: i32) -> (i32, i32) {
    %c0_i32 = arith.constant 0 : i32
    %c0_i32_0 = arith.constant 0 : i32
    %c0_i32_1 = arith.constant 0 : i32
    return %c0_i32, %c0_i32_0 : i32, i32
  }
  func.func @transform_3(%arg0: i32) -> (i32, i32) {
    %c0_i32 = arith.constant 0 : i32
    %c0_i32_0 = arith.constant 0 : i32
    %c0_i32_1 = arith.constant 0 : i32
    return %c0_i32, %c0_i32_0 : i32, i32
  }
  func.func @transform_4(%arg0: i32) -> (i32, i32) {
    %c0_i32 = arith.constant 0 : i32
    %c0_i32_0 = arith.constant 0 : i32
    %c0_i32_1 = arith.constant 0 : i32
    return %c0_i32, %c0_i32_0 : i32, i32
  }
  func.func @transform_5(%arg0: i32) -> (i32, i32) {
    %c0_i32 = arith.constant 0 : i32
    %c0_i32_0 = arith.constant 0 : i32
    %c0_i32_1 = arith.constant 0 : i32
    return %c0_i32, %c0_i32_0 : i32, i32
  }
  func.func @transform_6(%arg0: i32) -> (i32, i32) {
    %c0_i32 = arith.constant 0 : i32
    %c0_i32_0 = arith.constant 0 : i32
    %c0_i32_1 = arith.constant 0 : i32
    return %c0_i32, %c0_i32_0 : i32, i32
  }
  func.func @transform_7(%arg0: i32) -> (i32, i32) {
    %c0_i32 = arith.constant 0 : i32
    %c0_i32_0 = arith.constant 0 : i32
    return %arg0, %c0_i32 : i32, i32
  }
}

</mosaic_0001>

<bundles_post_ra>
// kernel: tpu_custom_call.1
= control target key start
LH: loop header
LB: loop body
LE: loop exit
PB: predicated region body
PF: predicated region fallthrough
CT: control target
= control target key end

     0   :  { %12 = vsyncpa [#allocation3], 0  ;;  %s1506_s0 = inlined_call_operand.hbm [shape: f32[16,32], index: 0, kind: input, shape index: {}]   ;;  %s1507_s1 = inlined_call_operand.hbm [shape: bf16[32,128], index: 1, kind: input, shape index: {}]   ;;  %s1508_s2 = inlined_call_operand.vmem [shape: f32[1,128], index: 2, kind: input, shape index: {}]   ;;  %s1509_s3 = inlined_call_operand.hbm [shape: bf16[128,128], index: 3, kind: input, shape index: {}]   ;;  %s1510_s4 = inlined_call_operand.vmem [shape: f32[1,128], index: 4, kind: input, shape index: {}]   ;;  %s1511_s5 = inlined_call_operand.hbm [shape: bf16[128,128], index: 5, kind: input, shape index: {}]   ;;  %s1512_s6 = inlined_call_operand.vmem [shape: f32[1,128], index: 6, kind: input, shape index: {}]   ;;  %s1513_s7 = inlined_call_operand.hbm [shape: f32[16,128], index: 7, kind: output, shape index: {}]  }
   0x1   :  { %14 = vsyncpa [#allocation3 + $0x1], 0 }
   0x2   :  { %15 = vsyncpa [#allocation6], 0 }
   0x3   :  { %16 = vsyncpa [#allocation9], 0 }
   0x4   :  { %17 = vsyncpa [#allocation4], 0 }
   0x5   :  { %19 = vsyncpa [#allocation4 + $0x1], 0  ;;  %s1206_s24 = smov 0   ;;  %s1208_s25 = smov 0  }
   0x6   :  { %s1210_s26 = smov 0   ;;  %s1212_s27 = smov 0  }
   0x7 LB: > { %s1227_s28 = sadd.s32 4294967295, %s1155_s27   ;;  %s754_s29 = sadd.s32 4294967294, %s1155_s27   ;;  %s1155_s27 = sphi %s1212_s27, %s1539_s27   ;;  %s1151_s26 = sphi %s1210_s26, %s1538_s26   ;;  %s1147_s25 = sphi %s1208_s25, %s1537_s25   ;;  %s1143_s24 = sphi %s1206_s24, %s1536_s24  }
   0x8   : > { %p45_p0 = scmp.ne.s32.totalorder %s1147_s25, %s1143_s24  ;;  %p1514_p1 = scmp.eq.s32.totalorder %s1227_s28, 0 }
   0x9   : > { %p201_p3 = scmp.eq.s32.totalorder %s754_s29, 1  ;;  %p755_p5 = scmp.ge.s32.totalorder %s1155_s27, 1 }
   0xa   : > { %p1236_p4 = por %p1514_p1, %p45_p0  ;;  %p208_p7 = scmp.lt.s32.totalorder %s1155_s27, 3 }
   0xb   : > { %p1241_p6 = por %p201_p3, %p45_p0  ;;  %s1157_s10 = smov [#allocation5]  }
   0xc   : > { %s1518_s30 = scalar_select %p1236_p4, 1, 0 }
   0xd   : > { %s1519_s8 = scalar_select %p1241_p6, 1, 0 }
   0xe   : > { %p1246_p8 = pnand %p755_p5, %p208_p7  ;;  %s220_s11 = sshll.u32 %s1157_s10, 4  ;;  %s1250_s11 = int_to_ptr.vmem [resolvable:$true] %s220_s11 }
   0xf   : > { %1520 = sst [smem:[#allocation15_spill]] %s1519_s8  ;;  %s1158_s13 = smov [#allocation7]  }
  0x10   : > { %s1521_s9 = scalar_select %p1246_p8, 1, 0 }
  0x11   : > { %p880_p9 = pneg %p1246_p8  ;;  %s236_s14 = sshll.u32 %s1158_s13, 4  ;;  %s1261_s14 = int_to_ptr.vmem [resolvable:$true] %s236_s14 }
  0x12   : > { %s1159_s15 = smov [#allocation8]   ;;  %s967_s19 = scalar_lea.hbm %s1507_s1, 256 }
  0x13   : > { %p1257_p11 = pnand %p880_p9, %p1514_p1  ;;  %s1263_s16 = sshll.u32 %s1159_s15, 4  ;;  %s253_s16 = int_to_ptr.vmem [resolvable:$true] %s1263_s16 }
  0x14   : > { %p968_p12 = scmp.ne.s32.totalorder %s1507_s1, %s967_s19  ;;  %p974_p5 = scmp.lt.u32.totalorder %s967_s19, %s1507_s1 }
  0x15   : > { %p1273_p13 = pneg %p1257_p11 }
  0x17   : > { %p970_p0 = pnand %p1273_p13, %p968_p12 }
  0x19   : > { %p971_p3 = pneg %p970_p0 }
  0x1b   : > { %p976_p7 = pnand %p974_p5, %p971_p3 }
  0x1d   : > { %979 = shalt.err (!%p976_p7)
}
  0x1e   : > { %s980_s10 = scalar_lea.vmem %s1250_s11, 256  ;;  %p988_p2 = scmp.lt.s32.totalorder %s1250_s11, %s1250_s11 }
  0x1f   : > { %p981_p9 = scmp.ne.s32.totalorder %s1250_s11, %s980_s10  ;;  %p989_p6 = scmp.lt.s32.totalorder %s980_s10, %s980_s10 }
  0x21   : > { %p983_p10 = pnand %p981_p9, %p1273_p13  ;;  %p990_p12 = por %p989_p6, %p988_p2 }
  0x23   : > { %p984_p1 = pneg %p983_p10 }
  0x25   : > { %p991_p0 = pnand %p990_p12, %p984_p1 }
  0x27   : > { %994 = shalt.err (!%p991_p0)
}
  0x28   : > { %s1160_s13 = smov 64   ;;  %s1161_s15 = smov 4  }
  0x29   : > { %883 = dma.hbm_to_vmem [thread:$0]  (!%p1257_p11), %s1507_s1, 256, %s1250_s11, [#allocation6], %s1160_s13, %s1160_s13, %s1161_s15  }
  0x2a   : > { %s995_s21 = scalar_lea.hbm %s1509_s3, 1024 }
  0x2b   : > { %p996_p1 = scmp.ne.s32.totalorder %s1509_s3, %s995_s21  ;;  %p1002_p10 = scmp.lt.u32.totalorder %s995_s21, %s1509_s3 }
  0x2d   : > { %p998_p2 = pnand %p996_p1, %p1273_p13 }
  0x2f   : > { %p999_p6 = pneg %p998_p2 }
  0x31   : > { %p1004_p3 = pnand %p1002_p10, %p999_p6 }
  0x33   : > { %1007 = shalt.err (!%p1004_p3)
}
  0x34   : > { %s1008_s11 = scalar_lea.vmem %s1261_s14, 1024  ;;  %p1016_p12 = scmp.lt.s32.totalorder %s1261_s14, %s1261_s14 }
  0x35   : > { %p1009_p5 = scmp.ne.s32.totalorder %s1261_s14, %s1008_s11  ;;  %p1017_p0 = scmp.lt.s32.totalorder %s1008_s11, %s1008_s11 }
  0x37   : > { %p1011_p7 = pnand %p1009_p5, %p1273_p13  ;;  %p1018_p1 = por %p1017_p0, %p1016_p12 }
  0x39   : > { %p1012_p9 = pneg %p1011_p7 }
  0x3b   : > { %p1019_p2 = pnand %p1018_p1, %p1012_p9 }
  0x3d   : > { %1022 = shalt.err (!%p1019_p2)
}
  0x3e   : > { %886 = dma.hbm_to_vmem [thread:$0]  (!%p1257_p11), %s1509_s3, 1024, %s1261_s14, [#allocation6], %s1160_s13, %s1160_s13, %s1161_s15  }
  0x3f   : > { %s1023_s20 = scalar_lea.hbm %s1511_s5, 1024 }
  0x40   : > { %p1024_p6 = scmp.ne.s32.totalorder %s1511_s5, %s1023_s20  ;;  %p1030_p5 = scmp.lt.u32.totalorder %s1023_s20, %s1511_s5 }
  0x42   : > { %p1026_p10 = pnand %p1024_p6, %p1273_p13 }
  0x44   : > { %p1027_p3 = pneg %p1026_p10 }
  0x46   : > { %p1032_p7 = pnand %p1030_p5, %p1027_p3 }
  0x48   : > { %1035 = shalt.err (!%p1032_p7)
}
  0x49   : > { %s1036_s11 = scalar_lea.vmem %s253_s16, 1024  ;;  %p1044_p1 = scmp.lt.s32.totalorder %s253_s16, %s253_s16 }
  0x4a   : > { %p1037_p9 = scmp.ne.s32.totalorder %s253_s16, %s1036_s11  ;;  %p1045_p2 = scmp.lt.s32.totalorder %s1036_s11, %s1036_s11 }
  0x4c   : > { %p1039_p12 = pnand %p1037_p9, %p1273_p13  ;;  %p1046_p4 = por %p1045_p2, %p1044_p1 }
  0x4e   : > { %p1040_p0 = pneg %p1039_p12 }
  0x50   : > { %p1047_p8 = pnand %p1046_p4, %p1040_p0 }
  0x52   : > { %1050 = shalt.err (!%p1047_p8)
}
  0x53   : > { %889 = dma.hbm_to_vmem [thread:$0]  (!%p1257_p11), %s1511_s5, 1024, %s253_s16, [#allocation9], %s1160_s13, %s1160_s13, %s1161_s15  }
  0x54   : > { %s1346_s22 = sadd.s32 1, %s1155_s27   ;;  %s32_s17 = sadd.s32 1, %s1151_s26 }
  0x55   : > { %s29_s12 = ssub.s32 %s1155_s27, %s1346_s22  ;;  %p39_p8 = scmp.ne.s32.totalorder %s1151_s26, %s1147_s25 }
  0x56   : > { %p30_p4 = scmp.eq.s32.totalorder %s29_s12, 0  ;;  %p40_p13 = scmp.eq.s32.totalorder %s1155_s27, 0 }
  0x57   : > { %p901_p6 = scmp.lt.s32.totalorder %s1155_s27, 2  ;;  %p1524_p3 = scmp.eq.s32.totalorder %s1227_s28, 1 }
  0x58   : > { %s1356_s18 = scalar_select %p30_p4, %s1151_s26, %s32_s17  }
  0x59   : > { %p41_p10 = por %p40_p13, %p39_p8  ;;  %p1360_p5 = por %p1524_p3, %p39_p8 }
  0x5a   : > { %s269_s20 = sand.u32 1, %s1151_s26   ;;  %s761_s21 = sshll.u32 %s1155_s27, 7 }
  0x5b   : > { %s760_s16 = sshll.u32 %s269_s20, 3  ;;  %s1369_s23 = scalar_lea.hbm %s1506_s0, %s761_s21 }
  0x5c   : > { %s273_s29 = scalar_lea.vmem [#allocation2], %s760_s16  ;;  %p1371_p11 = pnand %p901_p6, %p41_p10 }
  0x5d   : > { %s280_s10 = sshll.u32 %s273_s29, 4  ;;  %s270_s14 = scalar_lea.sflag [#allocation3], %s269_s20  ;;  %s1375_s10 = int_to_ptr.vmem [resolvable:$true] %s280_s10 }
  0x5e   : > { %s1051_s8 = scalar_lea.hbm %s1369_s23, 128  ;;  %p1053_p9 = pneg %p1371_p11 }
  0x5f   : > { %p1052_p7 = scmp.ne.s32.totalorder %s1369_s23, %s1051_s8  ;;  %s1056_s21 = scalar_lea.hbm %s1506_s0, 256 }
  0x60   : > { %p1057_p1 = scmp.lt.u32.totalorder %s1369_s23, %s1506_s0  ;;  %p1058_p2 = scmp.lt.u32.totalorder %s1056_s21, %s1051_s8 }
  0x61   : > { %p1054_p12 = pnand %p1053_p9, %p1052_p7  ;;  %p1060_p8 = scmp.lt.u32.totalorder %s1051_s8, %s1369_s23 }
  0x62   : > { %p1059_p4 = por %p1058_p2, %p1057_p1 }
  0x63   : > { %p1055_p0 = pneg %p1054_p12 }
  0x64   : > { %p1061_p13 = por %p1060_p8, %p1059_p4 }
  0x66   : > { %p1062_p6 = pnand %p1061_p13, %p1055_p0 }
  0x68   : > { %1065 = shalt.err (!%p1062_p6)
}
  0x69   : > { %s1066_s20 = scalar_lea.vmem %s1375_s10, 128  ;;  %s1162_s15 = smov [#allocation2]  }
  0x6a   : > { %p1067_p10 = scmp.ne.s32.totalorder %s1375_s10, %s1066_s20  ;;  %s1071_s29 = sshll.u32 %s1162_s15, 4  ;;  %s1072_s29 = int_to_ptr.vmem [resolvable:$false] %s1071_s29 }
  0x6b   : > { %s1073_s12 = scalar_lea.vmem %s1072_s29, 256  ;;  %p1074_p12 = scmp.lt.s32.totalorder %s1375_s10, %s1072_s29 }
  0x6c   : > { %p1069_p3 = pnand %p1067_p10, %p1053_p9  ;;  %p1075_p1 = scmp.lt.s32.totalorder %s1073_s12, %s1066_s20 }
  0x6e   : > { %p1070_p7 = pneg %p1069_p3  ;;  %p1076_p2 = por %p1075_p1, %p1074_p12 }
  0x70   : > { %p1077_p4 = pnand %p1076_p2, %p1070_p7 }
  0x72   : > { %1080 = shalt.err (!%p1077_p4)
}
  0x73   : > { %893 = dma.hbm_to_vmem [thread:$0]  (!%p1371_p11), %s1369_s23, 128, %s1375_s10, %s270_s14  }
  0x74   : > { %p1527_p0 = scmp.ne.s32.totalorder %s1521_s9, 0 }
  0x75   : > { %s1405_s8 = sand.u32 (!%p1527_p0), 1, %s1147_s25   ;;  %p1528_p9 = scmp.ne.s32.totalorder (!%p1527_p0), %s1518_s30, 0 }
  0x76   : > { %289 = sbr.rel (%p1527_p0) target bundleno = 833 (0x341), region = 48  ;;  %s763_s17 = sshll.u32 (!%p1527_p0), %s1405_s8, 3 }
  0x77   : > { %s292_s21 = scalar_lea.sflag (!%p1527_p0), [#allocation3], %s1405_s8  ;;  %s295_s16 = scalar_lea.vmem (!%p1527_p0), [#allocation2], %s763_s17 }
  0x7d   : > { %1126 = dma.done.wait (%p1528_p9), %s292_s21, 128  }
  0x7e   : > { %1128 = vsyncadd (%p1528_p9), %s292_s21, 4294967168  ;;  %p1529_p11 = scmp.eq.s32.totalorder %s1227_s28, 0 }
  0x80   : > { %1130 = dma.done.wait (%p1529_p11), [#allocation6], 1280   ;;  %p1530_p8 = pmov %p1529_p11 }
  0x82   : > { %1132 = vsyncadd (%p1530_p8), [#allocation6], 4294966016  ;;  %p1531_p13 = pmov %p1530_p8 }
  0x83   : > { %p1532_p6 = pmov %p1530_p8 }
  0x84   : > { %1134 = dma.done.wait (%p1531_p13), [#allocation9], 1024  }
  0x85   : > { %1136 = vsyncadd (%p1532_p6), [#allocation9], 4294966272  ;;  %v1163_v0 = vmov 0.0   ;;  %vm1164_vm0 = vmmov 0   ;;  %v945_v1 = vld [vmem:[#allocation5] sm:$0xff]   ;;  %v946_v2 = vld [vmem:[#allocation5 + $0x8] sm:$0xff]  }
  0x86   : > { %816 = vmatprep.subr.bf16.mxu0 %v1163_v0  ;;  %820 = vmatprep.mubr.msk.bf16.mxu0 %vm1164_vm0, %v1163_v0  ;;  %v339_v3 = vld [vmem:[%s295_s16] sm:$0xff]  ;;  %vm364_vm1 = vcmask 261120   ;;  %v949_v7 = vld [vmem:[#allocation7 + $0x10] sm:$0xff]   ;;  %v950_v8 = vld [vmem:[#allocation7 + $0x18] sm:$0xff]   ;;  %s792_s13 = sshll.u32 %s1227_s28, 7  ;;  %s337_s20 = scalar_lea.vmem [#allocation10], %s763_s17 }
  0x87   : > { %824 = vmatprep.subr.bf16.mxu1 %v1163_v0  ;;  %840 = vmatprep.mubr.msk.bf16.mxu1 %vm1164_vm0, %v1163_v0  ;;  %v947_v4 = vld [vmem:[#allocation7] sm:$0xff]   ;;  %v340_v5 = vpack.c.bf16 %v339_v3, %v339_v3  ;;  %v948_v6 = vld [vmem:[#allocation7 + $0x8] sm:$0xff]   ;;  %v953_v11 = vld [vmem:[#allocation7 + $0x30] sm:$0xff]   ;;  %s655_s15 = sshll.u32 %s337_s20, 4  ;;  %s1462_s21 = scalar_lea.hbm %s1513_s7, %s792_s13  ;;  %s1464_s15 = int_to_ptr.vmem [resolvable:$true] %s655_s15 }
  0x88   : > { %817 = vmatpush3.bf16.msra.mxu0 %v945_v1  ;;  %825 = vmatpush3.bf16.msra.mxu1 %v947_v4  ;;  %v951_v9 = vld [vmem:[#allocation7 + $0x20] sm:$0xff]   ;;  %v952_v10 = vld [vmem:[#allocation7 + $0x28] sm:$0xff]   ;;  %v954_v12 = vld [vmem:[#allocation7 + $0x38] sm:$0xff]   ;;  %s642_s16 = scalar_lea.sflag [#allocation4], %s1405_s8  ;;  %s1081_s30 = scalar_lea.vmem %s1464_s15, 128 }
  0x89   : > { %818 = vmatprep.subr.bf16.mxu0 %v1163_v0  ;;  %826 = vmatprep.subr.bf16.mxu1 %v1163_v0  ;;  %v955_v13 = vld [vmem:[#allocation8] sm:$0xff]   ;;  %v956_v14 = vld [vmem:[#allocation8 + $0x8] sm:$0xff]   ;;  %v957_v15 = vld [vmem:[#allocation8 + $0x10] sm:$0xff]   ;;  %p1082_p10 = scmp.ne.s32.totalorder %s1464_s15, %s1081_s30  ;;  %s1165_s28 = smov [#allocation10]  }
  0x8a   : > { %v958_v16 = vld [vmem:[#allocation8 + $0x18] sm:$0xff]   ;;  %v959_v17 = vld [vmem:[#allocation8 + $0x20] sm:$0xff]   ;;  %v960_v18 = vld [vmem:[#allocation8 + $0x28] sm:$0xff]   ;;  %s1085_s17 = sshll.u32 %s1165_s28, 4  ;;  %s1086_s17 = int_to_ptr.vmem [resolvable:$false] %s1085_s17 }
  0x8b   : > { %v768_v19 = vld [vmem:[%s1508_s2] ss:$0 sm:$0xff]  ;;  %v961_v27 = vld [vmem:[#allocation8 + $0x30] sm:$0xff]   ;;  %v962_v28 = vld [vmem:[#allocation8 + $0x38] sm:$0xff]   ;;  %p1083_p3 = pnand %p1082_p10, %p1360_p5  ;;  %s1087_s9 = scalar_lea.vmem %s1086_s17, 256 }
  0x8c   : > { %819 = vmatpush3.bf16.msra.mxu0 %v946_v2  ;;  %827 = vmatpush3.bf16.msra.mxu1 %v948_v6  ;;  %v772_v29 = vld [vmem:[%s1510_s4] ss:$0 sm:$0xff]  ;;  %p1088_p12 = scmp.lt.s32.totalorder %s1464_s15, %s1086_s17  ;;  %p1089_p1 = scmp.lt.s32.totalorder %s1087_s9, %s1081_s30 }
  0x8d   : > { %844 = vmatprep.subr.bf16.mxu0 %v1163_v0  ;;  %828 = vmatprep.subr.bf16.mxu1 %v1163_v0  ;;  %v781_v37 = vld [vmem:[%s1512_s6] ss:$0 sm:$0xff]  ;;  %p1084_p7 = pneg %p1083_p3 }
  0x8e   : > { %p1090_p2 = por %p1089_p1, %p1088_p12 }
  0x8f   : > { %821 = vmatmul.mubr.msk.bf16.vlgmr.msra.gmra.mrb[0].mxu0 %vm364_vm1, %v340_v5 }
  0x90   : > { %860 = vmatprep.mubr.msk.bf16.mxu0 %vm1164_vm0, %v1163_v0  ;;  %829 = vmatpush3.bf16.msra.mxu1 %v949_v7  ;;  %p1091_p4 = pnand %p1090_p2, %p1084_p7 }
  0x91   : > { %830 = vmatprep.subr.bf16.mxu1 %v1163_v0  ;;  %845 = vmatpush3.bf16.msra.mxu0 %v955_v13 }
  0x92   : > { %846 = vmatprep.subr.bf16.mxu0 %v1163_v0 }
  0x94   : > { %831 = vmatpush3.bf16.msra.mxu1 %v950_v8 }
  0x95   : > { %832 = vmatprep.subr.bf16.mxu1 %v1163_v0  ;;  %847 = vmatpush3.bf16.msra.mxu0 %v956_v14 }
  0x96   : > { %848 = vmatprep.subr.bf16.mxu0 %v1163_v0 }
  0x98   : > { %833 = vmatpush3.bf16.msra.mxu1 %v951_v9 }
  0x99   : > { %834 = vmatprep.subr.bf16.mxu1 %v1163_v0  ;;  %849 = vmatpush3.bf16.msra.mxu0 %v957_v15 }
  0x9a   : > { %850 = vmatprep.subr.bf16.mxu0 %v1163_v0 }
  0x9c   : > { %835 = vmatpush3.bf16.msra.mxu1 %v952_v10 }
  0x9d   : > { %836 = vmatprep.subr.bf16.mxu1 %v1163_v0  ;;  %851 = vmatpush3.bf16.msra.mxu0 %v958_v16 }
  0x9e   : > { %852 = vmatprep.subr.bf16.mxu0 %v1163_v0 }
  0xa0   : > { %837 = vmatpush3.bf16.msra.mxu1 %v953_v11 }
  0xa1   : > { %838 = vmatprep.subr.bf16.mxu1 %v1163_v0  ;;  %853 = vmatpush3.bf16.msra.mxu0 %v959_v17 }
  0xa2   : > { %854 = vmatprep.subr.bf16.mxu0 %v1163_v0 }
  0xa4   : > { %839 = vmatpush3.bf16.msra.mxu1 %v954_v12 }
  0xa5   : > { %855 = vmatpush3.bf16.msra.mxu0 %v960_v18 }
  0xa6   : > { %856 = vmatprep.subr.bf16.mxu0 %v1163_v0 }
  0xa9   : > { %857 = vmatpush3.bf16.msra.mxu0 %v961_v27 }
  0xaa   : > { %858 = vmatprep.subr.bf16.mxu0 %v1163_v0 }
  0xad   : > { %859 = vmatpush3.bf16.msra.mxu0 %v962_v28 }
 0x162   : > { %v402_v20 = vpop.f32.mrb[0].mxu0 }
 0x163   : > { %v403_v21 = vadd.f32 %v768_v19, %v402_v20  ;;  %v822_v22 = vpop.f32.mrb[1].mxu0 }
 0x164   : > { %v405_v23 = vpop.f32.mrb[2].mxu0 }
 0x165   : > { %v408_v24 = vmax.f32 %v403_v21, 0.0  ;;  %v823_v25 = vpop.f32.mrb[3].mxu0 }
 0x167   : > { %v409_v26 = vpack.c.bf16 %v408_v24, %v408_v24 }
 0x169   : > { %841 = vmatmul.mubr.bf16.vlgmr.msra.gmra.mrb[0].mxu1 %v409_v26 }
 0x23c   : > { %v515_v30 = vpop.f32.mrb[0].mxu1 }
 0x23d   : > { %v516_v31 = vadd.f32 %v772_v29, %v515_v30  ;;  %v842_v32 = vpop.f32.mrb[1].mxu1 }
 0x23e   : > { %v518_v33 = vpop.f32.mrb[2].mxu1 }
 0x23f   : > { %v521_v34 = vmax.f32 %v516_v31, 0.0  ;;  %v843_v35 = vpop.f32.mrb[3].mxu1 }
 0x241   : > { %v522_v36 = vpack.c.bf16 %v521_v34, %v521_v34 }
 0x243   : > { %861 = vmatmul.mubr.bf16.vlgmr.msra.gmra.mrb[4].mxu0 %v522_v36 }
 0x316   : > { %v628_v38 = vpop.f32.mrb[4].mxu0 }
 0x317   : > { %v629_v39 = vadd.f32 %v781_v37, %v628_v38  ;;  %v862_v40 = vpop.f32.mrb[5].mxu0 }
 0x318   : > { %v631_v41 = vpop.f32.mrb[6].mxu0 }
 0x319   : > { %v790_v42 = vmul.f32 -1.442695, %v629_v39  ;;  %v863_v43 = vpop.f32.mrb[7].mxu0 }
 0x31b   : > { %963 = vpow2.f32 %v790_v42 }
 0x325   : > { %v964_v44 = vpop.eup %963 }
 0x326   : > { %v637_v45 = vadd.f32 1.0, %v964_v44 }
 0x328   : > { %965 = vrcp.f32 %v637_v45 }
 0x332   : > { %v966_v46 = vpop.eup %965 }
 0x333   : > { %640 = vst [vmem:[%s337_s20] sm:$0xff] %v966_v46 }
 0x334   : > { %1094 = shalt.err (!%p1091_p4)
}
 0x335   : > { %s1095_s8 = scalar_lea.hbm %s1462_s21, 128  ;;  %s1099_s11 = scalar_lea.hbm %s1513_s7, 256 }
 0x336   : > { %p1096_p0 = scmp.ne.s32.totalorder %s1462_s21, %s1095_s8  ;;  %p1100_p8 = scmp.lt.u32.totalorder %s1462_s21, %s1513_s7 }
 0x337   : > { %p1101_p13 = scmp.lt.u32.totalorder %s1099_s11, %s1095_s8  ;;  %p1103_p10 = scmp.lt.u32.totalorder %s1095_s8, %s1462_s21 }
 0x338   : > { %p1097_p9 = pnand %p1096_p0, %p1360_p5 }
 0x339   : > { %p1102_p6 = por %p1101_p13, %p1100_p8 }
 0x33a   : > { %p1098_p11 = pneg %p1097_p9 }
 0x33b   : > { %p1104_p3 = por %p1103_p10, %p1102_p6 }
 0x33d   : > { %p1105_p7 = pnand %p1104_p3, %p1098_p11 }
 0x33f   : > { %1108 = shalt.err (!%p1105_p7)
}
 0x340   : > { %878 = dma.vmem_to_hbm [thread:$0]  (%p1360_p5), %s1464_s15, 128, %s1462_s21, %s642_s16  }
 0x341 PF: > { %s1533_s20 = sld [smem:[#allocation15_spill]]  ;;  %s667_s29 = sand.u32 1, %s1143_s24  }
 0x342   : > { %p1535_p1 = scmp.ge.s32.totalorder %s1155_s27, 2  ;;  %s668_s12 = scalar_lea.sflag [#allocation4], %s667_s29 }
 0x347   : > { %p1534_p12 = scmp.ne.s32.totalorder %s1533_s20, 0 }
 0x349   : > { %p895_p2 = pnand %p1535_p1, %p1534_p12 }
 0x34b   : > { %1138 = dma.done.wait (!%p895_p2), %s668_s12, 128  }
 0x34c   : > { %1140 = vsyncadd (!%p895_p2), %s668_s12, 4294967168  ;;  %p22_p4 = scmp.ge.s32.totalorder %s1346_s22, 4   ;;  %s1536_s24 = smov %s1147_s25 }
 0x34d   : > { %s1537_s25 = smov %s1151_s26  ;;  %s1538_s26 = smov %s1356_s18 }
 0x34e   : > { %s1539_s27 = smov %s1346_s22  ;;  %24 = sbr.rel (!%p22_p4) target bundleno = 7 (0x7), region = 105 }
 0x355   :  { %673 = vsyncpa [#allocation3], 1 }
 0x356   :  { %675 = vsyncpa [#allocation3 + $0x1], 1 }
 0x357   :  { %676 = vsyncpa [#allocation6], 1 }
 0x358   :  { %677 = vsyncpa [#allocation9], 1 }
 0x359   :  { %678 = vsyncpa [#allocation4], 1 }
 0x35a   :  { %680 = vsyncpa [#allocation4 + $0x1], 1 }

</bundles_post_ra>
